<compile_context>
chip_gen: v5e
topology: v5e:2x2
jax: 0.10.0
libtpu: 0.0.40
codegen_flags: <defaults>
</compile_context>

<pallas_src>
import functools

import jax
import jax.numpy as jnp
from jax.experimental import pallas as pl
from jax.experimental.pallas import tpu as pltpu


NODE_DIM = 32          # args.ds.node_dim
EDGE_DIM = 32          # args.ds.edge_dim
NB_MLP_LAYER = 2       # args.basic.nb_mlp_layer
NEG_SLOPE = 0.2

PACK = 4                        # edges packed per 128-lane vreg row
PACKED_DIM = PACK * EDGE_DIM    # 128
ROW_ALIGN = 16                  # bf16 sublane tile -> keep row tiles 16-aligned


def _leaky_relu(x, slope=NEG_SLOPE):
    return jnp.where(x > 0, x, slope * x)


def _round_up(x, m):
    return (x + m - 1) // m * m


@functools.lru_cache(maxsize=None)
def _default_tm():
    """Chip-aware default row tile (in packed rows): 8192 on 128-MiB-VMEM
    chips (v5e/v6e), 4096 on 64-MiB-VMEM chips (v7x)."""
    try:
        vmem = pltpu.get_tpu_info().vmem_capacity_bytes
    except Exception:
        vmem = 64 << 20          # conservative fallback
    return 8192 if vmem >= (100 << 20) else 4096


def e_basic_kernel(e_ref, vsrc_ref,
                   w1_ref, b1_ref, w2_ref, b2_ref,
                   wbc_ref, bbc_ref,
                   out_ref):
    # E_Basic: LeakyReLU on raw (packed) edge features -> Ein for GenRelation.
    ein = _leaky_relu(e_ref[...])                       # f32

    # GenRelation.A : 2-layer MLP over the packed source-node features Et.
    # Weights are block-diagonal (kron(eye(4), W)), so each 32-lane block of a
    # packed row is transformed independently, exactly like the unpacked math.
    # bf16 MXU operands, f32 accumulation.
    et = vsrc_ref[...]                                  # bf16 packed src feats
    h = jnp.dot(et, w1_ref[...], preferred_element_type=jnp.float32) + b1_ref[...]
    h = _leaky_relu(h)
    h = jnp.dot(h.astype(jnp.bfloat16), w2_ref[...],
                preferred_element_type=jnp.float32) + b2_ref[...]
    h = _leaky_relu(h)

    # GenRelation.B / .C fused into a single matmul, split on a 128-lane boundary.
    bc = jnp.dot(h.astype(jnp.bfloat16), wbc_ref[...],
                 preferred_element_type=jnp.float32) + bbc_ref[...]
    scale = jax.nn.sigmoid(bc[:, :PACKED_DIM])
    shift = bc[:, PACKED_DIM:]

    out_ref[...] = scale * ein + shift


def pack_params(params):
    """One-time parameter transform (hoisted out of the per-call forward):
    block-diagonal 4-way packed bf16 weights, fused B|C linear, tiled f32 biases."""
    w1, b1, w2, b2, wb, bb, wc, bc = params
    eye = jnp.eye(PACK, dtype=jnp.float32)
    w1p = jnp.kron(eye, w1).astype(jnp.bfloat16)                                  # [128,128]
    w2p = jnp.kron(eye, w2).astype(jnp.bfloat16)                                  # [128,128]
    wbcp = jnp.concatenate([jnp.kron(eye, wb), jnp.kron(eye, wc)],
                           axis=1).astype(jnp.bfloat16)                           # [128,256]
    b1p = jnp.tile(b1, PACK).reshape(1, PACKED_DIM).astype(jnp.float32)
    b2p = jnp.tile(b2, PACK).reshape(1, PACKED_DIM).astype(jnp.float32)
    bbcp = jnp.concatenate([jnp.tile(bb, PACK), jnp.tile(bc, PACK)]
                           ).reshape(1, 2 * PACKED_DIM).astype(jnp.float32)
    return (w1p, b1p, w2p, b2p, wbcp, bbcp)


@functools.partial(jax.jit, static_argnames=("tm",))
def _e_basic_forward_impl(V, E, src_idx, packed_params, tm):
    num_edges = E.shape[0]
    assert E.shape[1] == EDGE_DIM and V.shape[1] == NODE_DIM

    # ---- tile / pad bookkeeping (all static under jit) ----
    packed_rows = pl.cdiv(num_edges, PACK)
    tm_eff = min(tm, _round_up(packed_rows, ROW_ALIGN))
    # Force >= 2 grid steps when there is enough work: shards across v7x's two
    # TensorCores via dimension_semantics=("parallel",) and overlaps DMA with
    # compute on single-core chips.
    if packed_rows > ROW_ALIGN and pl.cdiv(packed_rows, tm_eff) < 2:
        tm_eff = _round_up(pl.cdiv(packed_rows, 2), ROW_ALIGN)
    grid = pl.cdiv(packed_rows, tm_eff)
    padded_rows = grid * tm_eff
    padded_edges = padded_rows * PACK
    pad = padded_edges - num_edges
    if pad:
        E = jnp.pad(E, ((0, pad), (0, 0)))
        src_idx = jnp.pad(src_idx, (0, pad))              # pad with node 0 (valid)

    # ---- glue: gather src-node features and pack 4 edges per 128-lane row ----
    # Gather output is bf16 (cast of the tiny V fused into the gather), so the
    # materialized Vsrc intermediate costs half the HBM write+read of f32.
    # TODO(synk): fully removing this HBM round trip needs the gather inside
    # the kernel (V resident in VMEM + take_along_axis on per-tile indices);
    # Mosaic's in-kernel gather lowering does not yet support a gather whose
    # output length differs from the operand length, so it stays in the wrapper.
    vsrc = jnp.take(V.astype(jnp.bfloat16), src_idx, axis=0, mode="clip")
    vsrc = vsrc.reshape(padded_rows, PACKED_DIM)
    e_packed = E.reshape(padded_rows, PACKED_DIM)

    w1p, b1p, w2p, b2p, wbcp, bbcp = packed_params

    row_spec_f32 = pl.BlockSpec((tm_eff, PACKED_DIM), lambda i: (i, 0))
    row_spec_bf16 = pl.BlockSpec((tm_eff, PACKED_DIM), lambda i: (i, 0))
    full = lambda arr: pl.BlockSpec(arr.shape, lambda i: (0, 0))

    # VMEM budget: streamed tiles (E f32 + Vsrc bf16 + out f32), double-buffered,
    # plus a few MiB for the (tiny) weights and slack.  Sized from actual usage so
    # v7x (64 MiB physical VMEM / TC) is never over-asked.
    bytes_per_row = PACKED_DIM * (4 + 2 + 4)
    vmem_limit = int(2 * tm_eff * bytes_per_row * 1.25) + (4 << 20)
    vmem_limit = min(100 << 20, max(16 << 20, vmem_limit))

    # Advisory cost for XLA scheduling around the custom call.
    flops = padded_rows * 2 * PACKED_DIM * (4 * PACKED_DIM)          # 3 matmuls/row
    bytes_accessed = (padded_rows * bytes_per_row
                      + 2 * (PACKED_DIM * PACKED_DIM) * 2            # w1p, w2p (bf16)
                      + PACKED_DIM * 2 * PACKED_DIM * 2              # wbcp (bf16)
                      + 4 * PACKED_DIM * 4)                          # biases (f32)

    out = pl.pallas_call(
        e_basic_kernel,
        out_shape=jax.ShapeDtypeStruct((padded_rows, PACKED_DIM), jnp.float32),
        grid_spec=pltpu.PrefetchScalarGridSpec(
            num_scalar_prefetch=0,
            grid=(grid,),
            in_specs=[
                row_spec_f32,                       # packed E tile (f32)
                row_spec_bf16,                      # packed Vsrc tile (bf16)
                full(w1p), full(b1p),               # MLP layer 1 (block-diag)
                full(w2p), full(b2p),               # MLP layer 2 (block-diag)
                full(wbcp), full(bbcp),             # fused B|C linear
            ],
            out_specs=pl.BlockSpec((tm_eff, PACKED_DIM), lambda i: (i, 0)),
        ),
        compiler_params=pltpu.CompilerParams(
            dimension_semantics=("parallel",),
            vmem_limit_bytes=vmem_limit),
        cost_estimate=pl.CostEstimate(
            flops=flops,
            transcendentals=padded_rows * PACKED_DIM,
            bytes_accessed=bytes_accessed),
    )(e_packed, vsrc, w1p, b1p, w2p, b2p, wbcp, bbcp)

    out = out.reshape(padded_edges, EDGE_DIM)
    return out[:num_edges] if pad else out


def e_basic_forward(V, E, src_idx, packed_params, *, tm=None):
    """Runs E_Basic.forward((G, V, E)) and returns the new edge features.

    packed_params comes from pack_params(params) (one-time transform).
    tm = row tile in *packed* rows (4 edges per packed row); chip-aware default.
    """
    if tm is None:
        tm = _default_tm()
    return _e_basic_forward_impl(V, E, src_idx, packed_params, tm)


def init_params(key):
    """Deterministic parameter init matching the PyTorch module's shapes."""
    ks = jax.random.split(key, 8)

    def lin(kw, kb, fan_in, fan_out):
        bound = 1.0 / jnp.sqrt(fan_in)
        w = jax.random.uniform(kw, (fan_in, fan_out), jnp.float32, -bound, bound)
        b = jax.random.uniform(kb, (fan_out,), jnp.float32, -bound, bound)
        return w, b

    # MLP channel sequence: (node_dim, edge_dim, edge_dim)  -> 2 linear layers
    w1, b1 = lin(ks[0], ks[1], NODE_DIM, EDGE_DIM)
    w2, b2 = lin(ks[2], ks[3], EDGE_DIM, EDGE_DIM)
    # B, C linears: edge_dim -> edge_dim
    wb, bb = lin(ks[4], ks[5], EDGE_DIM, EDGE_DIM)
    wc, bc = lin(ks[6], ks[7], EDGE_DIM, EDGE_DIM)
    return (w1, b1, w2, b2, wb, bb, wc, bc)


def reference_forward(V, E, src_idx, params):
    """Pure-JAX (f32) reference of the same math for a sanity check."""
    w1, b1, w2, b2, wb, bb, wc, bc = params
    ein = _leaky_relu(E)
    et = V[src_idx]
    h = _leaky_relu(et @ w1 + b1)
    h = _leaky_relu(h @ w2 + b2)
    scale = jax.nn.sigmoid(h @ wb + bb)
    shift = h @ wc + bc
    return scale * ein + shift


if __name__ == "__main__":
    key = jax.random.PRNGKey(0)
    k_v, k_e, k_s, k_p = jax.random.split(key, 4)

    num_nodes = 64
    num_edges = 256

    V = jax.random.normal(k_v, (num_nodes, NODE_DIM), jnp.float32)
    E = jax.random.normal(k_e, (num_edges, EDGE_DIM), jnp.float32)
    src_idx = jax.random.randint(k_s, (num_edges,), 0, num_nodes, jnp.int32)
    params = init_params(k_p)
    packed = pack_params(params)          # one-time packing, hoisted out of forward

    out = jax.block_until_ready(e_basic_forward(V, E, src_idx, packed))
    ref = reference_forward(V, E, src_idx, params)
    assert out.shape == (num_edges, EDGE_DIM)
    # bf16 MXU operands -> looser tolerance than pure f32 (per review note).
    assert jnp.max(jnp.abs(out - ref)) < 5e-2

    # Ragged edge count (exercises pad + slice path and the grid >= 2 splitting).
    num_edges2 = 300
    E2 = jax.random.normal(k_e, (num_edges2, EDGE_DIM), jnp.float32)
    src2 = jax.random.randint(k_s, (num_edges2,), 0, num_nodes, jnp.int32)
    out2 = jax.block_until_ready(e_basic_forward(V, E2, src2, packed))
    ref2 = reference_forward(V, E2, src2, params)
    assert out2.shape == (num_edges2, EDGE_DIM)
    assert jnp.max(jnp.abs(out2 - ref2)) < 5e-2

    print("KERNEL_OK")
</pallas_src>

<mosaic_0001>
module attributes {stable_mosaic.version = 11 : i64} {
  func.func @e_basic_kernel(%arg0: i32, %arg1: memref<32x128xf32, #tpu.memory_space<vmem>>, %arg2: memref<32x128xbf16, #tpu.memory_space<vmem>>, %arg3: memref<128x128xbf16, #tpu.memory_space<vmem>>, %arg4: memref<1x128xf32, #tpu.memory_space<vmem>>, %arg5: memref<128x128xbf16, #tpu.memory_space<vmem>>, %arg6: memref<1x128xf32, #tpu.memory_space<vmem>>, %arg7: memref<128x256xbf16, #tpu.memory_space<vmem>>, %arg8: memref<1x256xf32, #tpu.memory_space<vmem>>, %arg9: memref<32x128xf32, #tpu.memory_space<vmem>>) attributes {dimension_semantics = [#tpu.dimension_semantics<parallel>], iteration_bounds = array<i64: 2>, scalar_prefetch = 0 : i64, scratch_operands = 0 : i64, tpu.core_type = #tpu.core_type<tc>, window_params = [{transform_indices = @transform_0, window_bounds = array<i64: 32, 128>}, {transform_indices = @transform_1, window_bounds = array<i64: 32, 128>}, {pipeline_mode = #tpu.pipeline_mode<synchronous>, transform_indices = @transform_2, window_bounds = array<i64: 128, 128>}, {pipeline_mode = #tpu.pipeline_mode<synchronous>, transform_indices = @transform_3, window_bounds = array<i64: 1, 128>}, {pipeline_mode = #tpu.pipeline_mode<synchronous>, transform_indices = @transform_4, window_bounds = array<i64: 128, 128>}, {pipeline_mode = #tpu.pipeline_mode<synchronous>, transform_indices = @transform_5, window_bounds = array<i64: 1, 128>}, {pipeline_mode = #tpu.pipeline_mode<synchronous>, transform_indices = @transform_6, window_bounds = array<i64: 128, 256>}, {pipeline_mode = #tpu.pipeline_mode<synchronous>, transform_indices = @transform_7, window_bounds = array<i64: 1, 256>}, {transform_indices = @transform_8, window_bounds = array<i64: 32, 128>}]} {
    %c0 = arith.constant 0 : index
    %c0_0 = arith.constant 0 : index
    %0 = vector.load %arg1[%c0, %c0_0] : memref<32x128xf32, #tpu.memory_space<vmem>>, vector<32x128xf32>
    %cst = arith.constant 0.000000e+00 : f32
    %1 = vector.broadcast %cst : f32 to vector<32x128xf32>
    %2 = arith.cmpf ogt, %0, %1 : vector<32x128xf32>
    %cst_1 = arith.constant 2.000000e-01 : f32
    %3 = vector.broadcast %cst_1 : f32 to vector<32x128xf32>
    %4 = arith.mulf %3, %0 : vector<32x128xf32>
    %5 = arith.select %2, %0, %4 : vector<32x128xi1>, vector<32x128xf32>
    %c0_2 = arith.constant 0 : index
    %c0_3 = arith.constant 0 : index
    %6 = vector.load %arg2[%c0_2, %c0_3] : memref<32x128xbf16, #tpu.memory_space<vmem>>, vector<32x128xbf16>
    %c0_4 = arith.constant 0 : index
    %c0_5 = arith.constant 0 : index
    %7 = vector.load %arg3[%c0_4, %c0_5] : memref<128x128xbf16, #tpu.memory_space<vmem>>, vector<128x128xbf16>
    %cst_6 = arith.constant dense<0.000000e+00> : vector<32x128xf32>
    %8 = tpu.matmul %6, %7, %cst_6 {dimension_numbers = #tpu.dot_dimension_numbers<[1], [0], [0], [1], [0, 0, 1, 1], [], []>} : vector<32x128xbf16>, vector<128x128xbf16>, vector<32x128xf32> -> vector<32x128xf32>
    %c0_7 = arith.constant 0 : index
    %c0_8 = arith.constant 0 : index
    %9 = vector.load %arg4[%c0_7, %c0_8] : memref<1x128xf32, #tpu.memory_space<vmem>>, vector<1x128xf32>
    %10 = vector.broadcast %9 : vector<1x128xf32> to vector<32x128xf32>
    %11 = arith.addf %8, %10 : vector<32x128xf32>
    %cst_9 = arith.constant 0.000000e+00 : f32
    %12 = vector.broadcast %cst_9 : f32 to vector<32x128xf32>
    %13 = arith.cmpf ogt, %11, %12 : vector<32x128xf32>
    %cst_10 = arith.constant 2.000000e-01 : f32
    %14 = vector.broadcast %cst_10 : f32 to vector<32x128xf32>
    %15 = arith.mulf %14, %11 : vector<32x128xf32>
    %16 = arith.select %13, %11, %15 : vector<32x128xi1>, vector<32x128xf32>
    %17 = arith.truncf %16 : vector<32x128xf32> to vector<32x128xbf16>
    %c0_11 = arith.constant 0 : index
    %c0_12 = arith.constant 0 : index
    %18 = vector.load %arg5[%c0_11, %c0_12] : memref<128x128xbf16, #tpu.memory_space<vmem>>, vector<128x128xbf16>
    %cst_13 = arith.constant dense<0.000000e+00> : vector<32x128xf32>
    %19 = tpu.matmul %17, %18, %cst_13 {dimension_numbers = #tpu.dot_dimension_numbers<[1], [0], [0], [1], [0, 0, 1, 1], [], []>} : vector<32x128xbf16>, vector<128x128xbf16>, vector<32x128xf32> -> vector<32x128xf32>
    %c0_14 = arith.constant 0 : index
    %c0_15 = arith.constant 0 : index
    %20 = vector.load %arg6[%c0_14, %c0_15] : memref<1x128xf32, #tpu.memory_space<vmem>>, vector<1x128xf32>
    %21 = vector.broadcast %20 : vector<1x128xf32> to vector<32x128xf32>
    %22 = arith.addf %19, %21 : vector<32x128xf32>
    %cst_16 = arith.constant 0.000000e+00 : f32
    %23 = vector.broadcast %cst_16 : f32 to vector<32x128xf32>
    %24 = arith.cmpf ogt, %22, %23 : vector<32x128xf32>
    %cst_17 = arith.constant 2.000000e-01 : f32
    %25 = vector.broadcast %cst_17 : f32 to vector<32x128xf32>
    %26 = arith.mulf %25, %22 : vector<32x128xf32>
    %27 = arith.select %24, %22, %26 : vector<32x128xi1>, vector<32x128xf32>
    %28 = arith.truncf %27 : vector<32x128xf32> to vector<32x128xbf16>
    %c0_18 = arith.constant 0 : index
    %c0_19 = arith.constant 0 : index
    %29 = vector.load %arg7[%c0_18, %c0_19] : memref<128x256xbf16, #tpu.memory_space<vmem>>, vector<128x256xbf16>
    %cst_20 = arith.constant dense<0.000000e+00> : vector<32x256xf32>
    %30 = tpu.matmul %28, %29, %cst_20 {dimension_numbers = #tpu.dot_dimension_numbers<[1], [0], [0], [1], [0, 0, 1, 1], [], []>} : vector<32x128xbf16>, vector<128x256xbf16>, vector<32x256xf32> -> vector<32x256xf32>
    %c0_21 = arith.constant 0 : index
    %c0_22 = arith.constant 0 : index
    %31 = vector.load %arg8[%c0_21, %c0_22] : memref<1x256xf32, #tpu.memory_space<vmem>>, vector<1x256xf32>
    %32 = vector.broadcast %31 : vector<1x256xf32> to vector<32x256xf32>
    %33 = arith.addf %30, %32 : vector<32x256xf32>
    %34 = vector.extract_strided_slice %33 {offsets = [0, 0], sizes = [32, 128], strides = [1, 1]} : vector<32x256xf32> to vector<32x128xf32>
    %35 = arith.negf %34 : vector<32x128xf32>
    %36 = math.exp %35 : vector<32x128xf32>
    %cst_23 = arith.constant 1.000000e+00 : f32
    %37 = vector.broadcast %cst_23 : f32 to vector<32x128xf32>
    %38 = arith.addf %37, %36 : vector<32x128xf32>
    %39 = arith.divf %37, %38 : vector<32x128xf32>
    %40 = vector.extract_strided_slice %33 {offsets = [0, 128], sizes = [32, 128], strides = [1, 1]} : vector<32x256xf32> to vector<32x128xf32>
    %41 = arith.mulf %39, %5 : vector<32x128xf32>
    %42 = arith.addf %41, %40 : vector<32x128xf32>
    %c0_24 = arith.constant 0 : index
    %c0_25 = arith.constant 0 : index
    %43 = vector.load %arg9[%c0_24, %c0_25] : memref<32x128xf32, #tpu.memory_space<vmem>>, vector<32x128xf32>
    tpu.vector_store %arg9[%c0_24, %c0_25], %42 {strides = array<i32>} : memref<32x128xf32, #tpu.memory_space<vmem>>, vector<32x128xf32>,
    return
  }
  func.func @transform_0(%arg0: i32) -> (i32, i32) {
    %c0_i32 = arith.constant 0 : i32
    %c0_i32_0 = arith.constant 0 : i32
    return %arg0, %c0_i32 : i32, i32
  }
  func.func @transform_1(%arg0: i32) -> (i32, i32) {
    %c0_i32 = arith.constant 0 : i32
    %c0_i32_0 = arith.constant 0 : i32
    return %arg0, %c0_i32 : i32, i32
  }
  func.func @transform_2(%arg0: i32) -> (i32, i32) {
    %c0_i32 = arith.constant 0 : i32
    %c0_i32_0 = arith.constant 0 : i32
    %c0_i32_1 = arith.constant 0 : i32
    return %c0_i32, %c0_i32_0 : i32, i32
  }
  func.func @transform_3(%arg0: i32) -> (i32, i32) {
    %c0_i32 = arith.constant 0 : i32
    %c0_i32_0 = arith.constant 0 : i32
    %c0_i32_1 = arith.constant 0 : i32
    return %c0_i32, %c0_i32_0 : i32, i32
  }
  func.func @transform_4(%arg0: i32) -> (i32, i32) {
    %c0_i32 = arith.constant 0 : i32
    %c0_i32_0 = arith.constant 0 : i32
    %c0_i32_1 = arith.constant 0 : i32
    return %c0_i32, %c0_i32_0 : i32, i32
  }
  func.func @transform_5(%arg0: i32) -> (i32, i32) {
    %c0_i32 = arith.constant 0 : i32
    %c0_i32_0 = arith.constant 0 : i32
    %c0_i32_1 = arith.constant 0 : i32
    return %c0_i32, %c0_i32_0 : i32, i32
  }
  func.func @transform_6(%arg0: i32) -> (i32, i32) {
    %c0_i32 = arith.constant 0 : i32
    %c0_i32_0 = arith.constant 0 : i32
    %c0_i32_1 = arith.constant 0 : i32
    return %c0_i32, %c0_i32_0 : i32, i32
  }
  func.func @transform_7(%arg0: i32) -> (i32, i32) {
    %c0_i32 = arith.constant 0 : i32
    %c0_i32_0 = arith.constant 0 : i32
    %c0_i32_1 = arith.constant 0 : i32
    return %c0_i32, %c0_i32_0 : i32, i32
  }
  func.func @transform_8(%arg0: i32) -> (i32, i32) {
    %c0_i32 = arith.constant 0 : i32
    %c0_i32_0 = arith.constant 0 : i32
    return %arg0, %c0_i32 : i32, i32
  }
}

</mosaic_0001>

<bundles_post_ra>
// kernel: _e_basic_forward_impl.1
= control target key start
LH: loop header
LB: loop body
LE: loop exit
PB: predicated region body
PF: predicated region fallthrough
CT: control target
= control target key end

     0   :  { %s1127_s27 = smov 0   ;;  %s1326_s0 = inlined_call_operand.vmem [shape: f32[64,128], index: 0, kind: input, shape index: {}]   ;;  %s1327_s1 = inlined_call_operand.vmem [shape: bf16[64,128], index: 1, kind: input, shape index: {}]   ;;  %s1328_s2 = inlined_call_operand.vmem [shape: bf16[128,128], index: 2, kind: input, shape index: {}]   ;;  %s1329_s3 = inlined_call_operand.vmem [shape: f32[1,128], index: 3, kind: input, shape index: {}]   ;;  %s1330_s4 = inlined_call_operand.vmem [shape: bf16[128,128], index: 4, kind: input, shape index: {}]   ;;  %s1331_s5 = inlined_call_operand.vmem [shape: f32[1,128], index: 5, kind: input, shape index: {}]   ;;  %s1332_s6 = inlined_call_operand.vmem [shape: bf16[128,256], index: 6, kind: input, shape index: {}]   ;;  %s1333_s7 = inlined_call_operand.vmem [shape: f32[1,256], index: 7, kind: input, shape index: {}]   ;;  %s1334_s8 = inlined_call_operand.vmem [shape: f32[64,128], index: 8, kind: output, shape index: {}]  }
   0x1 LB: > { %s861_s28 = sadd.s32 4294967295, %s1080_s27   ;;  %p865_p0 = scmp.ge.s32.totalorder %s1080_s27, 1  ;;  %s1080_s27 = sphi %s1127_s27, %s18_s27  }
   0x2   : > { %p274_p1 = scmp.lt.s32.totalorder %s1080_s27, 3 }
   0x4   : > { %p275_p2 = pnand %p865_p0, %p274_p1 }
   0x5   : > { %s866_s15 = sshll.u32 (!%p275_p2), %s861_s28, 2 }
   0x6   : > { %278 = sbr.rel (%p275_p2) target bundleno = 516 (0x204), region = 52  ;;  %p314_p3 = scmp.lt.s32.totalorder (!%p275_p2), %s866_s15, 7 }
   0xb   : > { %v1023_v0 = vld [vmem:[%s1328_s2 + $0x38] sm:$0xff]  ;;  %v1022_v1 = vld [vmem:[%s1328_s2 + $0x30] sm:$0xff]  ;;  %v1021_v2 = vld [vmem:[%s1328_s2 + $0x28] sm:$0xff]  ;;  %s1336_s15 = smov (!%p314_p3, %s866_s15), 7 }
   0xc   : > { %431 = vmatpush.bf16.msra.mxu0 %v1023_v0  ;;  %v1020_v3 = vld [vmem:[%s1328_s2 + $0x20] sm:$0xff]  ;;  %v1019_v4 = vld [vmem:[%s1328_s2 + $0x18] sm:$0xff]  ;;  %v1018_v6 = vld [vmem:[%s1328_s2 + $0x10] sm:$0xff]  ;;  %s869_s26 = sshll.u32 %s1336_s15, 2  ;;  %s867_s13 = sshll.u32 %s1336_s15, 3 }
   0xd   : > { %v1031_v5 = vld [vmem:[%s1330_s4 + $0x38] sm:$0xff]  ;;  %v1030_v7 = vld [vmem:[%s1330_s4 + $0x30] sm:$0xff]  ;;  %v1017_v8 = vld [vmem:[%s1328_s2 + $0x8] sm:$0xff]  ;;  %s323_s12 = scalar_lea.vmem %s1327_s1, %s869_s26  ;;  %s1300_s17 = scalar_lea.vmem %s1326_s0, %s867_s13 }
   0xe   : > { %532 = vmatpush.bf16.msra.mxu1 %v1031_v5  ;;  %v1029_v9 = vld [vmem:[%s1330_s4 + $0x28] sm:$0xff]  ;;  %v1016_v10 = vld [vmem:[%s1328_s2] sm:$0xff]  ;;  %v1027_v14 = vld [vmem:[%s1330_s4 + $0x18] sm:$0xff]  ;;  %s1312_s20 = scalar_lea.vmem %s1334_s8, %s867_s13 }
   0xf   : > { %v1028_v11 = vld [vmem:[%s1330_s4 + $0x20] sm:$0xff]  ;;  %v1015_v13 = vld [vmem:[%s323_s12 + $0x8] sm:$0xff]  ;;  %v1026_v15 = vld [vmem:[%s1330_s4 + $0x10] sm:$0xff] }
  0x10   : > { %432 = vmatpush.bf16.msra.mxu0 %v1022_v1  ;;  %v1014_v12 = vld [vmem:[%s323_s12] sm:$0xff]  ;;  %v1025_v16 = vld [vmem:[%s1330_s4 + $0x8] sm:$0xff]  ;;  %v1002_v20 = vld [vmem:[%s1332_s6 + $0x70] sm:$0xf] }
  0x11   : > { %v1024_v17 = vld [vmem:[%s1330_s4] sm:$0xff]  ;;  %v1047_v21 = vld [vmem:[%s1332_s6 + $0x74] sm:$0xf0]  ;;  %v1046_v22 = vld [vmem:[%s1332_s6 + $0x74] sm:$0xf] }
  0x12   : > { %533 = vmatpush.bf16.msra.mxu1 %v1030_v7  ;;  %v1056_v18 = vld [vmem:[%s1329_s3] ss:$0 sm:$0xff]  ;;  %v1003_v23 = vor.u32 %v1047_v21, %v1002_v20  ;;  %v1004_v24 = vld [vmem:[%s1332_s6 + $0x78] sm:$0xf0]  ;;  %v1045_v26 = vld [vmem:[%s1332_s6 + $0x64] sm:$0xf0] }
  0x13   : > { %v994_v25 = vld [vmem:[%s1332_s6 + $0x60] sm:$0xf]  ;;  %v1007_v27 = vor.u32 %v1046_v22, %v1004_v24  ;;  %v1044_v28 = vld [vmem:[%s1332_s6 + $0x64] sm:$0xf]  ;;  %v996_v29 = vld [vmem:[%s1332_s6 + $0x68] sm:$0xf0] }
  0x14   : > { %433 = vmatpush.bf16.msra.mxu0 %v1021_v2  ;;  %667 = vmatpush.bf16.msra.mxu2 %v1003_v23  ;;  %v995_v30 = vor.u32 %v1045_v26, %v994_v25  ;;  %v999_v31 = vor.u32 %v1044_v28, %v996_v29  ;;  %v986_v32 = vld [vmem:[%s1332_s6 + $0x50] sm:$0xf]  ;;  %v1043_v33 = vld [vmem:[%s1332_s6 + $0x54] sm:$0xf0]  ;;  %v1042_v35 = vld [vmem:[%s1332_s6 + $0x54] sm:$0xf] }
  0x15   : > { %686 = vmatpush.bf16.msra.mxu3 %v1007_v27  ;;  %v988_v36 = vld [vmem:[%s1332_s6 + $0x58] sm:$0xf0]  ;;  %v987_v37 = vor.u32 %v1043_v33, %v986_v32  ;;  %v978_v40 = vld [vmem:[%s1332_s6 + $0x40] sm:$0xf]  ;;  %v1041_v41 = vld [vmem:[%s1332_s6 + $0x44] sm:$0xf0] }
  0x16   : > { %534 = vmatpush.bf16.msra.mxu1 %v1029_v9  ;;  %v991_v39 = vor.u32 %v1042_v35, %v988_v36  ;;  %v1040_v44 = vld [vmem:[%s1332_s6 + $0x44] sm:$0xf]  ;;  %v980_v45 = vld [vmem:[%s1332_s6 + $0x48] sm:$0xf0]  ;;  %v979_v47 = vor.u32 %v1041_v41, %v978_v40  ;;  %v970_v61 = vld [vmem:[%s1332_s6 + $0x30] sm:$0xf] }
  0x17   : > { %v983_v48 = vor.u32 %v1040_v44, %v980_v45  ;;  %v1039_v62 = vld [vmem:[%s1332_s6 + $0x34] sm:$0xf0]  ;;  %v1038_v63 = vld [vmem:[%s1332_s6 + $0x34] sm:$0xf]  ;;  %v972_v1 = vld [vmem:[%s1332_s6 + $0x38] sm:$0xf0] }
  0x18   : > { %434 = vmatpush.bf16.msra.mxu0 %v1020_v3  ;;  %668 = vmatpush.bf16.msra.mxu2 %v995_v30  ;;  %v971_v0 = vor.u32 %v1039_v62, %v970_v61  ;;  %v975_v2 = vor.u32 %v1038_v63, %v972_v1  ;;  %v962_v3 = vld [vmem:[%s1332_s6 + $0x20] sm:$0xf]  ;;  %v1036_v5 = vld [vmem:[%s1332_s6 + $0x24] sm:$0xf]  ;;  %v964_v7 = vld [vmem:[%s1332_s6 + $0x28] sm:$0xf0] }
  0x19   : > { %687 = vmatpush.bf16.msra.mxu3 %v999_v31  ;;  %v954_v9 = vld [vmem:[%s1332_s6 + $0x10] sm:$0xf]  ;;  %v1057_v22 = vld [vmem:[%s1331_s5] ss:$0 sm:$0xff] }
  0x1a   : > { %535 = vmatpush.bf16.msra.mxu1 %v1028_v11  ;;  %v1034_v11 = vld [vmem:[%s1332_s6 + $0x14] sm:$0xf]  ;;  %v581_v40 = vld [vmem:[%s1333_s7] sm:$0x3] }
  0x1b   : > { %v583_v41 = vperm.slane %v581_v40, 0 }
  0x1c   : > { %435 = vmatpush.bf16.msra.mxu0 %v1019_v4  ;;  %669 = vmatpush.bf16.msra.mxu2 %v987_v37  ;;  %v1037_v4 = vld [vmem:[%s1332_s6 + $0x24] sm:$0xf0] }
  0x1d   : > { %688 = vmatpush.bf16.msra.mxu3 %v991_v39 }
  0x1e   : > { %536 = vmatpush.bf16.msra.mxu1 %v1027_v14 }
  0x20   : > { %436 = vmatpush.bf16.msra.mxu0 %v1018_v6  ;;  %670 = vmatpush.bf16.msra.mxu2 %v979_v47  ;;  %v963_v6 = vor.u32 %v1037_v4, %v962_v3  ;;  %v1303_v3 = vperm.slane %v581_v40, 1 }
  0x21   : > { %689 = vmatpush.bf16.msra.mxu3 %v983_v48 }
  0x22   : > { %537 = vmatpush.bf16.msra.mxu1 %v1026_v15  ;;  %v946_v15 = vld [vmem:[%s1332_s6] sm:$0xf] }
  0x24   : > { %437 = vmatpush.bf16.msra.mxu0 %v1017_v8  ;;  %671 = vmatpush.bf16.msra.mxu2 %v971_v0  ;;  %v967_v8 = vor.u32 %v1036_v5, %v964_v7 }
  0x25   : > { %690 = vmatpush.bf16.msra.mxu3 %v975_v2 }
  0x26   : > { %538 = vmatpush.bf16.msra.mxu1 %v1025_v16  ;;  %v1033_v16 = vld [vmem:[%s1332_s6 + $0x4] sm:$0xf0] }
  0x28   : > { %438 = vmatpush.bf16.msra.mxu0 %v1016_v10  ;;  %672 = vmatpush.bf16.msra.mxu2 %v963_v6  ;;  %v1035_v10 = vld [vmem:[%s1332_s6 + $0x14] sm:$0xf0] }
  0x29   : > { %691 = vmatpush.bf16.msra.mxu3 %v967_v8 }
  0x2a   : > { %539 = vmatpush.bf16.msra.mxu1 %v1024_v17  ;;  %v1032_v17 = vld [vmem:[%s1332_s6 + $0x4] sm:$0xf] }
  0x2b   : > { %439 = vmatmul.bf16.vlgmr.msra.gmra.mxu0 %v1014_v12  ;;  %v955_v12 = vor.u32 %v1035_v10, %v954_v9 }
  0x2d   : > { %673 = vmatpush.bf16.msra.mxu2 %v955_v12  ;;  %v332_v12 = vld [vmem:[%s1300_s17 + $0x8] sm:$0xff] }
  0x2e   : > { %vm336_vm13 = vcmp.gt.f32.partialorder %v332_v12, 0.0 }
  0x3b   : > { %444 = vmatmul.bf16.gmra.mxu0 %v1015_v13  ;;  %v956_v13 = vld [vmem:[%s1332_s6 + $0x18] sm:$0xf0] }
  0x3c   : > { %v959_v14 = vor.u32 %v1034_v11, %v956_v13 }
  0x3e   : > { %692 = vmatpush.bf16.msra.mxu3 %v959_v14 }
  0xa8   : > { %v440_v19 = vpop.f32.mrf.mxu0 }
  0xa9   : > { %v441_v34 = vadd.f32 %v1056_v18, %v440_v19  ;;  %v948_v19 = vld [vmem:[%s1332_s6 + $0x8] sm:$0xf0] }
  0xaa   : > { %v951_v20 = vor.u32 %v1032_v17, %v948_v19  ;;  %v340_v17 = vmul.f32 0.2, %v332_v12 }
  0xab   : > { %v454_v42 = vmul.f32 0.2, %v441_v34  ;;  %vm450_vm0 = vcmp.gt.f32.partialorder %v441_v34, 0.0 }
  0xac   : > { %693 = vmatpush.bf16.msra.mxu3 %v951_v20 }
  0xad   : > { %v458_v49 = vsel %vm450_vm0, %v441_v34, %v454_v42 }
  0xb0   : > { %v442_v38 = vpop.f32.mrf.mxu0 }
  0xb1   : > { %v443_v43 = vadd.f32 %v1056_v18, %v442_v38 }
  0xb3   : > { %v455_v46 = vmul.f32 0.2, %v443_v43  ;;  %vm451_vm1 = vcmp.gt.f32.partialorder %v443_v43, 0.0 }
  0xb5   : > { %v459_v50 = vsel %vm451_vm1, %v443_v43, %v455_v46 }
  0xb6   : > { %v462_v51 = vpack.c.bf16 %v459_v50, %v458_v49 }
  0xb8   : > { %v445_v52 = vpop.f32.mrf.mxu0  ;;  %540 = vmatmul.bf16.vlgmr.msra.gmra.mxu1 %v462_v51 }
  0xb9   : > { %v446_v53 = vadd.f32 %v1056_v18, %v445_v52 }
  0xbb   : > { %v456_v55 = vmul.f32 0.2, %v446_v53  ;;  %vm452_vm2 = vcmp.gt.f32.partialorder %v446_v53, 0.0 }
  0xbd   : > { %v460_v58 = vsel %vm452_vm2, %v446_v53, %v456_v55 }
  0xc0   : > { %v447_v54 = vpop.f32.mrf.mxu0 }
  0xc1   : > { %v448_v56 = vadd.f32 %v1056_v18, %v447_v54  ;;  %v947_v18 = vor.u32 %v1033_v16, %v946_v15 }
  0xc3   : > { %v457_v57 = vmul.f32 0.2, %v448_v56  ;;  %vm453_vm3 = vcmp.gt.f32.partialorder %v448_v56, 0.0  ;;  %674 = vmatpush.bf16.msra.mxu2 %v947_v18 }
  0xc5   : > { %v461_v59 = vsel %vm453_vm3, %v448_v56, %v457_v57  ;;  %v331_v57 = vld [vmem:[%s1300_s17] sm:$0xff] }
  0xc6   : > { %v463_v60 = vpack.c.bf16 %v461_v59, %v460_v58  ;;  %vm335_vm8 = vcmp.gt.f32.partialorder %v331_v57, 0.0 }
  0xc8   : > { %545 = vmatmul.bf16.gmra.mxu1 %v463_v60  ;;  %v339_v60 = vmul.f32 0.2, %v331_v57 }
  0xca   : > { %v343_v7 = vsel %vm335_vm8, %v331_v57, %v339_v60 }
 0x135   : > { %v541_v21 = vpop.f32.mrf.mxu1 }
 0x136   : > { %v542_v23 = vadd.f32 %v1057_v22, %v541_v21 }
 0x138   : > { %v555_v25 = vmul.f32 0.2, %v542_v23  ;;  %vm551_vm4 = vcmp.gt.f32.partialorder %v542_v23, 0.0 }
 0x13a   : > { %v559_v28 = vsel %vm551_vm4, %v542_v23, %v555_v25 }
 0x13d   : > { %v543_v24 = vpop.f32.mrf.mxu1 }
 0x13e   : > { %v544_v26 = vadd.f32 %v1057_v22, %v543_v24 }
 0x140   : > { %v556_v27 = vmul.f32 0.2, %v544_v26  ;;  %vm552_vm5 = vcmp.gt.f32.partialorder %v544_v26, 0.0 }
 0x142   : > { %v560_v29 = vsel %vm552_vm5, %v544_v26, %v556_v27  ;;  %v344_v26 = vsel %vm336_vm13, %v332_v12, %v340_v17 }
 0x143   : > { %v563_v30 = vpack.c.bf16 %v560_v29, %v559_v28 }
 0x145   : > { %v546_v31 = vpop.f32.mrf.mxu1  ;;  %675 = vmatmul.bf16.vlgmr.msra.gmra.mxu2 %v563_v30  ;;  %694 = vmatmul.bf16.vlgmr.msra.gmra.mxu3 %v563_v30 }
 0x146   : > { %v547_v32 = vadd.f32 %v1057_v22, %v546_v31  ;;  %v333_v31 = vld [vmem:[%s1300_s17 + $0x10] sm:$0xff] }
 0x147   : > { %vm337_vm2 = vcmp.gt.f32.partialorder %v333_v31, 0.0 }
 0x148   : > { %v557_v34 = vmul.f32 0.2, %v547_v32  ;;  %vm553_vm6 = vcmp.gt.f32.partialorder %v547_v32, 0.0 }
 0x14a   : > { %v561_v37 = vsel %vm553_vm6, %v547_v32, %v557_v34 }
 0x14d   : > { %v548_v33 = vpop.f32.mrf.mxu1 }
 0x14e   : > { %v549_v35 = vadd.f32 %v1057_v22, %v548_v33 }
 0x150   : > { %v558_v36 = vmul.f32 0.2, %v549_v35  ;;  %vm554_vm7 = vcmp.gt.f32.partialorder %v549_v35, 0.0 }
 0x152   : > { %v562_v38 = vsel %vm554_vm7, %v549_v35, %v558_v36  ;;  %v341_v36 = vmul.f32 0.2, %v333_v31 }
 0x153   : > { %v564_v39 = vpack.c.bf16 %v562_v38, %v561_v37 }
 0x155   : > { %680 = vmatmul.bf16.gmra.mxu2 %v564_v39  ;;  %699 = vmatmul.bf16.gmra.mxu3 %v564_v39 }
 0x1c8   : > { %v676_v42 = vpop.f32.mrf.mxu2  ;;  %v695_v58 = vpop.f32.mrf.mxu3 }
 0x1c9   : > { %v677_v43 = vadd.f32 %v676_v42, %v583_v41  ;;  %v696_v14 = vadd.f32 %v695_v58, %v1303_v3 }
 0x1cb   : > { %v1008_v44 = vmul.f32 -1.442695, %v677_v43 }
 0x1cd   : > { %1058 = vpow2.f32 %v1008_v44  ;;  %v345_v44 = vsel %vm337_vm2, %v333_v31, %v341_v36 }
 0x1d0   : > { %v678_v45 = vpop.f32.mrf.mxu2  ;;  %v697_v18 = vpop.f32.mrf.mxu3 }
 0x1d1   : > { %v679_v46 = vadd.f32 %v678_v45, %v583_v41  ;;  %v698_v33 = vadd.f32 %v697_v18, %v1303_v3 }
 0x1d3   : > { %v1059_v47 = vpop.eup %1058  ;;  %v1009_v48 = vmul.f32 -1.442695, %v679_v46 }
 0x1d4   : > { %v717_v49 = vadd.f32 1.0, %v1059_v47 }
 0x1d5   : > { %1060 = vpow2.f32 %v1009_v48  ;;  %v334_v48 = vld [vmem:[%s1300_s17 + $0x18] sm:$0xff] }
 0x1d6   : > { %1062 = vrcp.f32 %v717_v49  ;;  %v732_v61 = vand.u32 2147483648, %v717_v49  ;;  %v730_v0 = vand.u32 2147483647, %v717_v49  ;;  %vm726_vm10 = vweird.f32 %v717_v49 }
 0x1d7   : > { %vm338_vm7 = vcmp.gt.f32.partialorder %v334_v48, 0.0 }
 0x1d8   : > { %v681_v50 = vpop.f32.mrf.mxu2  ;;  %v733_v8 = vor.u32 1.1754944e-38, %v732_v61  ;;  %vm731_vm12 = vcmp.eq.f32.partialorder %v730_v0, 8.507059e+37 }
 0x1d9   : > { %v682_v51 = vadd.f32 %v681_v50, %v583_v41 }
 0x1db   : > { %v1061_v52 = vpop.eup %1060  ;;  %v1010_v53 = vmul.f32 -1.442695, %v682_v51 }
 0x1dc   : > { %v1063_v54 = vpop.eup %1062  ;;  %v718_v55 = vadd.f32 1.0, %v1061_v52 }
 0x1dd   : > { %v722_v56 = vmul.f32 %v1063_v54, %v717_v49  ;;  %1064 = vpow2.f32 %v1010_v53  ;;  %vm727_vm9 = vweird.f32 %v1063_v54  ;;  %v342_v53 = vmul.f32 0.2, %v334_v48 }
 0x1de   : > { %1066 = vrcp.f32 %v718_v55  ;;  %vm728_vm11 = vmor %vm726_vm10, %vm727_vm9  ;;  %v747_v19 = vand.u32 2147483648, %v718_v55  ;;  %v745_v22 = vand.u32 2147483647, %v718_v55  ;;  %vm741_vm15 = vweird.f32 %v718_v55 }
 0x1df   : > { %v723_v59 = vsub.f32 1.0, %v722_v56 }
 0x1e0   : > { %v683_v62 = vpop.f32.mrf.mxu2  ;;  %v748_v27 = vor.u32 1.1754944e-38, %v747_v19  ;;  %vm746_vm1 = vcmp.eq.f32.partialorder %v745_v22, 8.507059e+37 }
 0x1e1   : > { %v724_v63 = vmul.f32 %v1063_v54, %v723_v59  ;;  %v684_v1 = vadd.f32 %v683_v62, %v583_v41  ;;  %v700_v41 = vpop.f32.mrf.mxu3  ;;  %v346_v59 = vsel %vm338_vm7, %v334_v48, %v342_v53 }
 0x1e2   : > { %v701_v50 = vadd.f32 %v700_v41, %v1303_v3 }
 0x1e3   : > { %v1065_v2 = vpop.eup %1064  ;;  %v725_v4 = vadd.f32 %v1063_v54, %v724_v63  ;;  %v1011_v5 = vmul.f32 -1.442695, %v684_v1 }
 0x1e4   : > { %v1067_v6 = vpop.eup %1066  ;;  %v719_v9 = vadd.f32 1.0, %v1065_v2 }
 0x1e5   : > { %v729_v10 = vsel %vm728_vm11, %v1063_v54, %v725_v4  ;;  %v737_v11 = vmul.f32 %v1067_v6, %v718_v55  ;;  %1068 = vpow2.f32 %v1011_v5  ;;  %vm742_vm14 = vweird.f32 %v1067_v6 }
 0x1e6   : > { %v734_v13 = vsel %vm731_vm12, %v733_v8, %v729_v10  ;;  %1070 = vrcp.f32 %v719_v9  ;;  %vm743_vm0 = vmor %vm741_vm15, %vm742_vm14  ;;  %v762_v37 = vand.u32 2147483648, %v719_v9  ;;  %v760_v40 = vand.u32 2147483647, %v719_v9 }
 0x1e7   : > { %v781_v15 = vmul.f32 %v734_v13, %v343_v7  ;;  %v738_v16 = vsub.f32 1.0, %v737_v11  ;;  %vm756_vm4 = vweird.f32 %v719_v9 }
 0x1e8   : > { %v763_v45 = vor.u32 1.1754944e-38, %v762_v37  ;;  %vm761_vm6 = vcmp.eq.f32.partialorder %v760_v40, 8.507059e+37 }
 0x1e9   : > { %v785_v20 = vadd.f32 %v781_v15, %v696_v14  ;;  %v739_v21 = vmul.f32 %v1067_v6, %v738_v16  ;;  %v702_v60 = vpop.f32.mrf.mxu3 }
 0x1ea   : > { %v703_v0 = vadd.f32 %v702_v60, %v1303_v3 }
 0x1eb   : > { %v1069_v23 = vpop.eup %1068  ;;  %789 = vst [vmem:[%s1312_s20] sm:$0xff] %v785_v20  ;;  %v740_v24 = vadd.f32 %v1067_v6, %v739_v21 }
 0x1ec   : > { %v1071_v25 = vpop.eup %1070  ;;  %v720_v28 = vadd.f32 1.0, %v1069_v23 }
 0x1ed   : > { %v744_v29 = vsel %vm743_vm0, %v1067_v6, %v740_v24  ;;  %v752_v30 = vmul.f32 %v1071_v25, %v719_v9  ;;  %vm757_vm3 = vweird.f32 %v1071_v25 }
 0x1ee   : > { %v749_v32 = vsel %vm746_vm1, %v748_v27, %v744_v29  ;;  %1072 = vrcp.f32 %v720_v28  ;;  %vm758_vm5 = vmor %vm756_vm4, %vm757_vm3  ;;  %v777_v54 = vand.u32 2147483648, %v720_v28  ;;  %v775_v57 = vand.u32 2147483647, %v720_v28 }
 0x1ef   : > { %v782_v34 = vmul.f32 %v749_v32, %v344_v26  ;;  %v753_v35 = vsub.f32 1.0, %v752_v30  ;;  %vm771_vm9 = vweird.f32 %v720_v28 }
 0x1f0   : > { %v778_v61 = vor.u32 1.1754944e-38, %v777_v54  ;;  %vm776_vm11 = vcmp.eq.f32.partialorder %v775_v57, 8.507059e+37 }
 0x1f1   : > { %v786_v38 = vadd.f32 %v782_v34, %v698_v33  ;;  %v754_v39 = vmul.f32 %v1071_v25, %v753_v35 }
 0x1f3   : > { %790 = vst [vmem:[%s1312_s20 + $0x8] sm:$0xff] %v786_v38  ;;  %v755_v42 = vadd.f32 %v1071_v25, %v754_v39 }
 0x1f4   : > { %v1073_v43 = vpop.eup %1072 }
 0x1f5   : > { %v759_v46 = vsel %vm758_vm5, %v1071_v25, %v755_v42  ;;  %v767_v47 = vmul.f32 %v1073_v43, %v720_v28  ;;  %vm772_vm8 = vweird.f32 %v1073_v43 }
 0x1f6   : > { %v764_v49 = vsel %vm761_vm6, %v763_v45, %v759_v46  ;;  %vm773_vm10 = vmor %vm771_vm9, %vm772_vm8 }
 0x1f7   : > { %v783_v51 = vmul.f32 %v764_v49, %v345_v44  ;;  %v768_v52 = vsub.f32 1.0, %v767_v47 }
 0x1f9   : > { %v787_v55 = vadd.f32 %v783_v51, %v701_v50  ;;  %v769_v56 = vmul.f32 %v1073_v43, %v768_v52 }
 0x1fb   : > { %791 = vst [vmem:[%s1312_s20 + $0x10] sm:$0xff] %v787_v55  ;;  %v770_v58 = vadd.f32 %v1073_v43, %v769_v56 }
 0x1fd   : > { %v774_v62 = vsel %vm773_vm10, %v1073_v43, %v770_v58 }
 0x1fe   : > { %v779_v63 = vsel %vm776_vm11, %v778_v61, %v774_v62 }
 0x1ff   : > { %v784_v1 = vmul.f32 %v779_v63, %v346_v59 }
 0x201   : > { %v788_v2 = vadd.f32 %v784_v1, %v703_v0 }
 0x203   : > { %792 = vst [vmem:[%s1312_s20 + $0x18] sm:$0xff] %v788_v2 }
 0x204 PF: > { %s18_s27 = sadd.s32 1, %s1080_s27  }
 0x205   : > { %p15_p4 = scmp.ge.s32.totalorder %s18_s27, 4  }
 0x207   :  { %17 = sbr.rel (!%p15_p4) target bundleno = 1 (0x1), region = 85 }

</bundles_post_ra>
